<compile_context>
chip_gen: v7x
topology: tpu7x:2x2x1
jax: 0.10.0
libtpu: 0.0.40
codegen_flags: <defaults>
</compile_context>

<pallas_src>
import functools

import jax
import jax.numpy as jnp
from jax.experimental import pallas as pl
from jax.experimental.pallas import tpu as pltpu


def _round_up(x, m):
    return (x + m - 1) // m * m


# ----------------------------------------------------------------------------
# Main kernel: tiled propagate + GCNII combine + weight transform + ReLU,
# plus per-row-tile BatchNorm partial statistics.
# ----------------------------------------------------------------------------
def _gcn_prop_kernel(a_ref, x_ref, x0_ref, w_ref,
                     y_ref, psum_ref, psq_ref, acc_ref, *, alpha):
    k = pl.program_id(1)

    @pl.when(k == 0)
    def _init():
        acc_ref[...] = jnp.zeros_like(acc_ref)

    # Propagate: acc += A_hat[i, k] @ x[k]   (bf16 operands, f32 MXU accum).
    acc_ref[...] += jnp.dot(a_ref[...], x_ref[...],
                            preferred_element_type=jnp.float32)

    @pl.when(k == pl.num_programs(1) - 1)
    def _finalize():
        # GCNII combination with initial residual (beta == 1 -> plain matmul).
        z = (1.0 - alpha) * acc_ref[...] + alpha * x0_ref[...]
        y = jnp.dot(z, w_ref[...], preferred_element_type=jnp.float32)
        y = jnp.maximum(y, 0.0)                       # ReLU
        y_ref[...] = y
        # Per-row-tile BN partials (one pass: sum and sum of squares).
        # Replicated over 8 sublanes so the output block stays (8,128)-aligned;
        # the host divides the combined total by 8.
        s = jnp.sum(y, axis=0, keepdims=True)
        sq = jnp.sum(y * y, axis=0, keepdims=True)
        psum_ref[...] = jnp.broadcast_to(s, psum_ref.shape)
        psq_ref[...] = jnp.broadcast_to(sq, psq_ref.shape)


# ----------------------------------------------------------------------------
# Second kernel: apply the already-finalized BatchNorm scale/shift (in place).
# ----------------------------------------------------------------------------
def _bn_apply_kernel(y_ref, scale_ref, shift_ref, out_ref):
    out_ref[...] = y_ref[...] * scale_ref[...] + shift_ref[...]


def gcn_block_pallas(a_hat, x, x0, weight, gamma, beta, *,
                     alpha, eps=1e-5, tm=512, tk=512):
    """a_hat: dense, already gcn_norm-normalized adjacency [N, N]."""
    n, d = x.shape
    f32 = jnp.float32

    # Lane-dense feature dimension.
    dp = max(128, _round_up(d, 128))
    # Tile sizes (clamped so small graphs still form a valid grid).
    tm = min(tm, _round_up(n, 8))
    tk = min(tk, _round_up(n, 128))
    n_r = _round_up(n, tm)      # padded rows
    n_c = _round_up(n, tk)      # padded cols (contraction dim)
    g = n_r // tm               # number of row tiles

    # Pad; bf16 the big streams (A_hat, x), keep x0 / W / BN params in f32.
    a_p = jnp.pad(a_hat.astype(f32), ((0, n_r - n), (0, n_c - n))).astype(jnp.bfloat16)
    x_p = jnp.pad(x.astype(f32), ((0, n_c - n), (0, dp - d))).astype(jnp.bfloat16)
    x0_p = jnp.pad(x0.astype(f32), ((0, n_r - n), (0, dp - d)))
    w_p = jnp.pad(weight.astype(f32), ((0, dp - d), (0, dp - d)))
    gamma_p = jnp.pad(gamma.astype(f32), (0, dp - d), constant_values=1.0)
    beta_p = jnp.pad(beta.astype(f32), (0, dp - d))

    # VMEM budget (double-buffered streams + accumulator) with headroom,
    # clamped to stay inside v7x's 64 MiB physical VMEM.
    est = (2 * tm * tk * 2 + 2 * tk * dp * 2 + 2 * tm * dp * 4
           + 2 * dp * dp * 4 + 2 * tm * dp * 4 + 4 * 8 * dp * 4 + tm * dp * 4)
    vmem_limit = int(min(max(2 * est, 16 * 1024 * 1024), 40 * 1024 * 1024))

    cost = pl.CostEstimate(
        flops=2 * n_r * n_c * dp + 2 * n_r * dp * dp,
        transcendentals=0,
        bytes_accessed=(n_r * n_c * 2 + n_c * dp * 2 + n_r * dp * 4
                        + dp * dp * 4 + n_r * dp * 4 + 2 * g * 8 * dp * 4),
    )

    kernel = functools.partial(_gcn_prop_kernel, alpha=float(alpha))

    y, psum, psq = pl.pallas_call(
        kernel,
        out_shape=(
            jax.ShapeDtypeStruct((n_r, dp), f32),       # y = ReLU(z @ W)
            jax.ShapeDtypeStruct((g * 8, dp), f32),     # per-tile sum (x8)
            jax.ShapeDtypeStruct((g * 8, dp), f32),     # per-tile sum of sq (x8)
        ),
        grid_spec=pltpu.PrefetchScalarGridSpec(
            num_scalar_prefetch=0,
            grid=(n_r // tm, n_c // tk),
            in_specs=[
                pl.BlockSpec((tm, tk), lambda i, k: (i, k)),   # A_hat (bf16)
                pl.BlockSpec((tk, dp), lambda i, k: (k, 0)),   # x (bf16)
                pl.BlockSpec((tm, dp), lambda i, k: (i, 0)),   # x0 (f32)
                pl.BlockSpec((dp, dp), lambda i, k: (0, 0)),   # W (resident)
            ],
            out_specs=[
                pl.BlockSpec((tm, dp), lambda i, k: (i, 0)),
                pl.BlockSpec((8, dp), lambda i, k: (i, 0)),
                pl.BlockSpec((8, dp), lambda i, k: (i, 0)),
            ],
            scratch_shapes=[pltpu.VMEM((tm, dp), f32)],
        ),
        compiler_params=pltpu.CompilerParams(
            dimension_semantics=("parallel", "arbitrary"),
            vmem_limit_bytes=vmem_limit,
        ),
        cost_estimate=cost,
    )(a_p, x_p, x0_p, w_p)

    # Finalize BatchNorm statistics (tiny, plain XLA).  Padded rows of y are
    # exactly zero, so they contribute nothing; divide by the true N (and by 8
    # for the sublane replication).
    inv = 1.0 / (8.0 * n)
    mean = jnp.sum(psum, axis=0) * inv
    ex2 = jnp.sum(psq, axis=0) * inv
    var = jnp.maximum(ex2 - mean * mean, 0.0)           # biased variance
    scale = gamma_p * jax.lax.rsqrt(var + eps)
    shift = beta_p - mean * scale

    out = pl.pallas_call(
        _bn_apply_kernel,
        out_shape=jax.ShapeDtypeStruct((n_r, dp), f32),
        grid_spec=pltpu.PrefetchScalarGridSpec(
            num_scalar_prefetch=0,
            grid=(n_r // tm,),
            in_specs=[
                pl.BlockSpec((tm, dp), lambda i: (i, 0)),
                pl.BlockSpec((1, dp), lambda i: (0, 0)),
                pl.BlockSpec((1, dp), lambda i: (0, 0)),
            ],
            out_specs=pl.BlockSpec((tm, dp), lambda i: (i, 0)),
        ),
        compiler_params=pltpu.CompilerParams(
            dimension_semantics=("parallel",),
        ),
        input_output_aliases={0: 0},    # reuse y's buffer for the output
    )(y, scale.reshape(1, dp), shift.reshape(1, dp))

    return out[:n, :d]


def gcn_norm_dense(edge_index, edge_weight, num_nodes, dtype=jnp.float32):
    """Dense A_hat = D^-1/2 (A + I) D^-1/2, matching torch_geometric gcn_norm.

    Normalization is folded into the edge weights at O(E) cost before the
    scatter, so no O(N^2) normalization passes are needed."""
    src = edge_index[0]
    dst = edge_index[1]
    w = edge_weight.astype(dtype)
    # message passing: out[i] = sum_{j->i} w * x[j]  =>  A[i, j] = w
    deg = jnp.zeros((num_nodes,), dtype).at[dst].add(w) + 1.0   # + self loop
    dinv = jnp.where(deg > 0, jax.lax.rsqrt(deg), 0.0)
    norm_w = dinv[dst] * w * dinv[src]
    a_hat = jnp.zeros((num_nodes, num_nodes), dtype).at[dst, src].add(norm_w)
    diag = jnp.arange(num_nodes)
    a_hat = a_hat.at[diag, diag].add(dinv * dinv)               # normalized self loops
    return a_hat


def gcn_block_forward(x_with_edges, weight, gamma, beta, *, alpha,
                      eps=1e-5, tm=512, tk=512):
    """Mirrors GCNBlock.forward on the (x, x_orig, edge_indices, edge_weights, _) tuple."""
    x, x_orig, edge_indices, edge_weights, _ = x_with_edges
    last_hidd = x
    n = x.shape[0]
    a_hat = gcn_norm_dense(edge_indices, edge_weights, n, dtype=jnp.float32)
    x1 = gcn_block_pallas(a_hat, x, x_orig, weight, gamma, beta,
                          alpha=alpha, eps=eps, tm=tm, tk=tk)
    return (x1, x_orig, edge_indices, edge_weights, last_hidd)


if __name__ == "__main__":
    N, D, E = 256, 32, 1024       # nodes, feature dim (inp_dim == out_dim), edges
    alpha = 0.1
    eps = 1e-5

    key = jax.random.PRNGKey(0)
    kx, kx0, ke, kw, kwt = jax.random.split(key, 5)

    x = jax.random.normal(kx, (N, D), dtype=jnp.float32)
    x_orig = jax.random.normal(kx0, (N, D), dtype=jnp.float32)
    edge_indices = jax.random.randint(ke, (2, E), 0, N, dtype=jnp.int32)
    edge_weights = jax.random.uniform(kw, (E,), dtype=jnp.float32) + 0.5

    # GCN2Conv weight1: (channels, channels), glorot-style init (deterministic).
    limit = (6.0 / (D + D)) ** 0.5
    weight = jax.random.uniform(kwt, (D, D), dtype=jnp.float32,
                                minval=-limit, maxval=limit)
    # BatchNorm1d affine params (PyTorch defaults).
    gamma = jnp.ones((D,), dtype=jnp.float32)
    beta = jnp.zeros((D,), dtype=jnp.float32)

    x_with_edges = (x, x_orig, edge_indices, edge_weights, None)
    out_tuple = gcn_block_forward(x_with_edges, weight, gamma, beta,
                                  alpha=alpha, eps=eps)
    x_new = jax.block_until_ready(out_tuple[0])

    # Pure-JAX f32 reference (bf16 A/x streams in the kernel => small tolerance).
    a_hat_ref = gcn_norm_dense(edge_indices, edge_weights, N)
    h = a_hat_ref @ x
    z = (1.0 - alpha) * h + alpha * x_orig
    y_ref = jnp.maximum(z @ weight, 0.0)
    mu = y_ref.mean(axis=0)
    va = ((y_ref - mu) ** 2).mean(axis=0)
    ref = (y_ref - mu) * jax.lax.rsqrt(va + eps) * gamma + beta

    assert x_new.shape == (N, D)
    assert jnp.all(jnp.isfinite(x_new))
    max_err = float(jnp.max(jnp.abs(x_new - ref)))
    assert max_err < 5e-2, f"max abs err vs reference: {max_err}"
    print("KERNEL_OK")
</pallas_src>

<mosaic_0001>
module attributes {stable_mosaic.version = 11 : i64} {
  func.func @_gcn_prop_kernel(%arg0: i32, %arg1: i32, %arg2: memref<256x256xbf16, #tpu.memory_space<vmem>>, %arg3: memref<256x128xbf16, #tpu.memory_space<vmem>>, %arg4: memref<256x128xf32, #tpu.memory_space<vmem>>, %arg5: memref<128x128xf32, #tpu.memory_space<vmem>>, %arg6: memref<256x128xf32, #tpu.memory_space<vmem>>, %arg7: memref<8x128xf32, #tpu.memory_space<vmem>>, %arg8: memref<8x128xf32, #tpu.memory_space<vmem>>, %arg9: memref<256x128xf32, #tpu.memory_space<vmem>>) attributes {dimension_semantics = [#tpu.dimension_semantics<parallel>, #tpu.dimension_semantics<arbitrary>], iteration_bounds = array<i64: 1, 1>, scalar_prefetch = 0 : i64, scratch_operands = 1 : i64, tpu.core_type = #tpu.core_type<tc>, window_params = [{transform_indices = @transform_0, window_bounds = array<i64: 256, 256>}, {transform_indices = @transform_1, window_bounds = array<i64: 256, 128>}, {transform_indices = @transform_2, window_bounds = array<i64: 256, 128>}, {pipeline_mode = #tpu.pipeline_mode<synchronous>, transform_indices = @transform_3, window_bounds = array<i64: 128, 128>}, {transform_indices = @transform_4, window_bounds = array<i64: 256, 128>}, {transform_indices = @transform_5, window_bounds = array<i64: 8, 128>}, {transform_indices = @transform_6, window_bounds = array<i64: 8, 128>}]} {
    %c0_i32 = arith.constant 0 : i32
    %0 = arith.cmpi eq, %arg1, %c0_i32 : i32
    %1 = arith.extui %0 : i1 to i32
    %c0_i32_0 = arith.constant 0 : i32
    %2 = arith.cmpi ne, %1, %c0_i32_0 : i32
    scf.if %2 {
      %cst_10 = arith.constant 0.000000e+00 : f32
      %12 = vector.broadcast %cst_10 : f32 to vector<256x128xf32>
      %c0_11 = arith.constant 0 : index
      %c0_12 = arith.constant 0 : index
      %13 = vector.load %arg9[%c0_11, %c0_12] : memref<256x128xf32, #tpu.memory_space<vmem>>, vector<256x128xf32>
      tpu.vector_store %arg9[%c0_11, %c0_12], %12 {strides = array<i32>} : memref<256x128xf32, #tpu.memory_space<vmem>>, vector<256x128xf32>,
    } else {
    }
    %c0 = arith.constant 0 : index
    %c0_1 = arith.constant 0 : index
    %3 = vector.load %arg9[%c0, %c0_1] : memref<256x128xf32, #tpu.memory_space<vmem>>, vector<256x128xf32>
    %c0_2 = arith.constant 0 : index
    %c0_3 = arith.constant 0 : index
    %4 = vector.load %arg2[%c0_2, %c0_3] : memref<256x256xbf16, #tpu.memory_space<vmem>>, vector<256x256xbf16>
    %c0_4 = arith.constant 0 : index
    %c0_5 = arith.constant 0 : index
    %5 = vector.load %arg3[%c0_4, %c0_5] : memref<256x128xbf16, #tpu.memory_space<vmem>>, vector<256x128xbf16>
    %cst = arith.constant dense<0.000000e+00> : vector<256x128xf32>
    %6 = tpu.matmul %4, %5, %cst {dimension_numbers = #tpu.dot_dimension_numbers<[1], [0], [0], [1], [0, 0, 1, 1], [], []>} : vector<256x256xbf16>, vector<256x128xbf16>, vector<256x128xf32> -> vector<256x128xf32>
    %7 = arith.addf %3, %6 : vector<256x128xf32>
    %c0_6 = arith.constant 0 : index
    %c0_7 = arith.constant 0 : index
    %8 = vector.load %arg9[%c0_6, %c0_7] : memref<256x128xf32, #tpu.memory_space<vmem>>, vector<256x128xf32>
    tpu.vector_store %arg9[%c0_6, %c0_7], %7 {strides = array<i32>} : memref<256x128xf32, #tpu.memory_space<vmem>>, vector<256x128xf32>,
    %c0_i32_8 = arith.constant 0 : i32
    %9 = arith.cmpi eq, %arg1, %c0_i32_8 : i32
    %10 = arith.extui %9 : i1 to i32
    %c0_i32_9 = arith.constant 0 : i32
    %11 = arith.cmpi ne, %10, %c0_i32_9 : i32
    scf.if %11 {
      %c0_10 = arith.constant 0 : index
      %c0_11 = arith.constant 0 : index
      %12 = vector.load %arg9[%c0_10, %c0_11] : memref<256x128xf32, #tpu.memory_space<vmem>>, vector<256x128xf32>
      %cst_12 = arith.constant 0.899999976 : f32
      %13 = vector.broadcast %cst_12 : f32 to vector<256x128xf32>
      %14 = arith.mulf %13, %12 : vector<256x128xf32>
      %c0_13 = arith.constant 0 : index
      %c0_14 = arith.constant 0 : index
      %15 = vector.load %arg4[%c0_13, %c0_14] : memref<256x128xf32, #tpu.memory_space<vmem>>, vector<256x128xf32>
      %cst_15 = arith.constant 1.000000e-01 : f32
      %16 = vector.broadcast %cst_15 : f32 to vector<256x128xf32>
      %17 = arith.mulf %16, %15 : vector<256x128xf32>
      %18 = arith.addf %14, %17 : vector<256x128xf32>
      %c0_16 = arith.constant 0 : index
      %c0_17 = arith.constant 0 : index
      %19 = vector.load %arg5[%c0_16, %c0_17] : memref<128x128xf32, #tpu.memory_space<vmem>>, vector<128x128xf32>
      %cst_18 = arith.constant dense<0.000000e+00> : vector<256x128xf32>
      %20 = tpu.matmul %18, %19, %cst_18 {dimension_numbers = #tpu.dot_dimension_numbers<[1], [0], [0], [1], [0, 0, 1, 1], [], []>} : vector<256x128xf32>, vector<128x128xf32>, vector<256x128xf32> -> vector<256x128xf32>
      %cst_19 = arith.constant 0.000000e+00 : f32
      %21 = vector.broadcast %cst_19 : f32 to vector<256x128xf32>
      %22 = arith.maximumf %20, %21 : vector<256x128xf32>
      %c0_20 = arith.constant 0 : index
      %c0_21 = arith.constant 0 : index
      %23 = vector.load %arg6[%c0_20, %c0_21] : memref<256x128xf32, #tpu.memory_space<vmem>>, vector<256x128xf32>
      tpu.vector_store %arg6[%c0_20, %c0_21], %22 {strides = array<i32>} : memref<256x128xf32, #tpu.memory_space<vmem>>, vector<256x128xf32>,
      %cst_22 = arith.constant dense<0.000000e+00> : vector<128xf32>
      %24 = vector.multi_reduction <add>, %22, %cst_22 [0] : vector<256x128xf32> to vector<128xf32>
      %25 = vector.shape_cast %24 : vector<128xf32> to vector<1x128xf32>
      %26 = arith.mulf %22, %22 : vector<256x128xf32>
      %cst_23 = arith.constant dense<0.000000e+00> : vector<128xf32>
      %27 = vector.multi_reduction <add>, %26, %cst_23 [0] : vector<256x128xf32> to vector<128xf32>
      %28 = vector.shape_cast %27 : vector<128xf32> to vector<1x128xf32>
      %29 = vector.shape_cast %25 : vector<1x128xf32> to vector<1x128xf32>
      %30 = vector.broadcast %29 : vector<1x128xf32> to vector<8x128xf32>
      %c0_24 = arith.constant 0 : index
      %c0_25 = arith.constant 0 : index
      %31 = vector.load %arg7[%c0_24, %c0_25] : memref<8x128xf32, #tpu.memory_space<vmem>>, vector<8x128xf32>
      tpu.vector_store %arg7[%c0_24, %c0_25], %30 {strides = array<i32>} : memref<8x128xf32, #tpu.memory_space<vmem>>, vector<8x128xf32>,
      %32 = vector.shape_cast %28 : vector<1x128xf32> to vector<1x128xf32>
      %33 = vector.broadcast %32 : vector<1x128xf32> to vector<8x128xf32>
      %c0_26 = arith.constant 0 : index
      %c0_27 = arith.constant 0 : index
      %34 = vector.load %arg8[%c0_26, %c0_27] : memref<8x128xf32, #tpu.memory_space<vmem>>, vector<8x128xf32>
      tpu.vector_store %arg8[%c0_26, %c0_27], %33 {strides = array<i32>} : memref<8x128xf32, #tpu.memory_space<vmem>>, vector<8x128xf32>,
    } else {
    }
    return
  }
  func.func @transform_0(%arg0: i32, %arg1: i32) -> (i32, i32) {
    %c0_i32 = arith.constant 0 : i32
    return %arg0, %arg1 : i32, i32
  }
  func.func @transform_1(%arg0: i32, %arg1: i32) -> (i32, i32) {
    %c0_i32 = arith.constant 0 : i32
    %c0_i32_0 = arith.constant 0 : i32
    return %arg1, %c0_i32 : i32, i32
  }
  func.func @transform_2(%arg0: i32, %arg1: i32) -> (i32, i32) {
    %c0_i32 = arith.constant 0 : i32
    %c0_i32_0 = arith.constant 0 : i32
    return %arg0, %c0_i32 : i32, i32
  }
  func.func @transform_3(%arg0: i32, %arg1: i32) -> (i32, i32) {
    %c0_i32 = arith.constant 0 : i32
    %c0_i32_0 = arith.constant 0 : i32
    %c0_i32_1 = arith.constant 0 : i32
    return %c0_i32, %c0_i32_0 : i32, i32
  }
  func.func @transform_4(%arg0: i32, %arg1: i32) -> (i32, i32) {
    %c0_i32 = arith.constant 0 : i32
    %c0_i32_0 = arith.constant 0 : i32
    return %arg0, %c0_i32 : i32, i32
  }
  func.func @transform_5(%arg0: i32, %arg1: i32) -> (i32, i32) {
    %c0_i32 = arith.constant 0 : i32
    %c0_i32_0 = arith.constant 0 : i32
    return %arg0, %c0_i32 : i32, i32
  }
  func.func @transform_6(%arg0: i32, %arg1: i32) -> (i32, i32) {
    %c0_i32 = arith.constant 0 : i32
    %c0_i32_0 = arith.constant 0 : i32
    return %arg0, %c0_i32 : i32, i32
  }
}

</mosaic_0001>

<bundles_post_ra>
// kernel: tpu_custom_call.1
= control target key start
LH: loop header
LB: loop body
LE: loop exit
PB: predicated region body
PF: predicated region fallthrough
CT: control target
= control target key end

     0   :  { %12 = vsyncpa [#allocation4], 0  ;;  %s2061_s0 = inlined_call_operand.hbm [shape: bf16[256,256], index: 0, kind: input, shape index: {}]   ;;  %s2062_s1 = inlined_call_operand.hbm [shape: bf16[256,128], index: 1, kind: input, shape index: {}]   ;;  %s2063_s2 = inlined_call_operand.hbm [shape: f32[256,128], index: 2, kind: input, shape index: {}]   ;;  %s2064_s3 = inlined_call_operand.hbm [shape: f32[128,128], index: 3, kind: input, shape index: {}]   ;;  %s2065_s4 = inlined_call_operand.hbm [shape: f32[256,128], index: 4, kind: output, shape index: {0}]   ;;  %s2066_s5 = inlined_call_operand.hbm [shape: f32[8,128], index: 5, kind: output, shape index: {1}]   ;;  %s2067_s6 = inlined_call_operand.hbm [shape: f32[8,128], index: 6, kind: output, shape index: {2}]  }
   0x1   :  { %13 = vsyncpa [#allocation7], 0 }
   0x2   :  { %14 = vsyncpa [#allocation10], 0 }
   0x3   :  { %15 = vsyncpa [#allocation5], 0 }
   0x4   :  { %16 = vsyncpa [#allocation13], 0  ;;  %s1888_s21 = smov [#allocation6]   ;;  %s1724_s25 = scalar_lea.hbm %s2062_s1, 2048 }
   0x5   :  { %s34_s22 = sshll.u32 %s1888_s21, 4  ;;  %p1725_p0 = scmp.ne.s32.totalorder %s2062_s1, %s1724_s25  ;;  %s35_s22 = int_to_ptr.vmem [resolvable:$true] %s34_s22 }
   0x6   :  { %p1728_p1 = scmp.lt.u32.totalorder %s1724_s25, %s2062_s1 }
   0x8   :  { %p1730_p2 = pnand %p1728_p1, %p1725_p0 }
   0xa   :  { %1733 = shalt.err (!%p1730_p2)
}
   0xb   :  { %s1734_s30 = scalar_lea.vmem %s35_s22, 2048  ;;  %p1739_p4 = scmp.lt.s32.totalorder %s35_s22, %s35_s22 }
   0xc   :  { %p1735_p3 = scmp.ne.s32.totalorder %s35_s22, %s1734_s30  ;;  %p1740_p5 = scmp.lt.s32.totalorder %s1734_s30, %s1734_s30 }
   0xe   :  { %p1741_p6 = por %p1740_p5, %p1739_p4 }
  0x10   :  { %p1742_p7 = pnand %p1741_p6, %p1735_p3 }
  0x12   :  { %1745 = shalt.err (!%p1742_p7)
}
  0x13   :  { %s1889_s7 = smov 64   ;;  %s1890_s8 = smov 4  }
  0x14   :  { %40 = dma.hbm_to_vmem [thread:$0]  %s2062_s1, 2048, %s35_s22, [#allocation7], %s1889_s7, %s1889_s7, %s1890_s8  }
  0x15   :  { %s1891_s11 = smov [#allocation3]   ;;  %s1746_s15 = scalar_lea.hbm %s2061_s0, 4096 }
  0x16   :  { %s22_s12 = sshll.u32 %s1891_s11, 4  ;;  %p1747_p8 = scmp.ne.s32.totalorder %s2061_s0, %s1746_s15  ;;  %s23_s12 = int_to_ptr.vmem [resolvable:$true] %s22_s12 }
  0x17   :  { %p1750_p9 = scmp.lt.u32.totalorder %s1746_s15, %s2061_s0 }
  0x19   :  { %p1752_p10 = pnand %p1750_p9, %p1747_p8 }
  0x1b   :  { %1755 = shalt.err (!%p1752_p10)
}
  0x1c   :  { %s1756_s20 = scalar_lea.vmem %s23_s12, 4096  ;;  %p1761_p12 = scmp.lt.s32.totalorder %s23_s12, %s23_s12 }
  0x1d   :  { %p1757_p11 = scmp.ne.s32.totalorder %s23_s12, %s1756_s20  ;;  %p1762_p13 = scmp.lt.s32.totalorder %s1756_s20, %s1756_s20 }
  0x1f   :  { %p1763_p0 = por %p1762_p13, %p1761_p12 }
  0x21   :  { %p1764_p1 = pnand %p1763_p0, %p1757_p11 }
  0x23   :  { %1767 = shalt.err (!%p1764_p1)
}
  0x24   :  { %s1892_s1 = smov 128   ;;  %s1893_s21 = smov 8  }
  0x25   :  { %28 = dma.hbm_to_vmem [thread:$0]  %s2061_s0, 4096, %s23_s12, [#allocation4], %s1892_s1, %s1892_s1, %s1893_s21  }
  0x26   :  { %s1894_s24 = smov [#allocation8]   ;;  %s1895_s26 = smov [#allocation9]  }
  0x27   :  { %s46_s25 = sshll.u32 %s1894_s24, 4  ;;  %s58_s27 = sshll.u32 %s1895_s26, 4  ;;  %s47_s25 = int_to_ptr.vmem [resolvable:$true] %s46_s25  ;;  %s1961_s27 = int_to_ptr.vmem [resolvable:$true] %s58_s27 }
  0x28   :  { %s1768_s30 = scalar_lea.hbm %s2063_s2, 4096 }
  0x29   :  { %p1769_p2 = scmp.ne.s32.totalorder %s2063_s2, %s1768_s30  ;;  %p1772_p3 = scmp.lt.u32.totalorder %s1768_s30, %s2063_s2 }
  0x2b   :  { %p1774_p4 = pnand %p1772_p3, %p1769_p2 }
  0x2d   :  { %1777 = shalt.err (!%p1774_p4)
}
  0x2e   :  { %s1778_s0 = scalar_lea.vmem %s47_s25, 4096  ;;  %p1783_p6 = scmp.lt.s32.totalorder %s47_s25, %s47_s25 }
  0x2f   :  { %p1779_p5 = scmp.ne.s32.totalorder %s47_s25, %s1778_s0  ;;  %p1784_p7 = scmp.lt.s32.totalorder %s1778_s0, %s1778_s0 }
  0x31   :  { %p1785_p8 = por %p1784_p7, %p1783_p6 }
  0x33   :  { %p1786_p9 = pnand %p1785_p8, %p1779_p5 }
  0x35   :  { %1789 = shalt.err (!%p1786_p9)
}
  0x36   :  { %52 = dma.hbm_to_vmem [thread:$0]  %s2063_s2, 4096, %s47_s25, [#allocation7], %s1892_s1, %s1892_s1, %s1893_s21  }
  0x37   :  { %s1790_s15 = scalar_lea.hbm %s2064_s3, 2048 }
  0x38   :  { %p1791_p10 = scmp.ne.s32.totalorder %s2064_s3, %s1790_s15  ;;  %p1794_p11 = scmp.lt.u32.totalorder %s1790_s15, %s2064_s3 }
  0x3a   :  { %p1796_p12 = pnand %p1794_p11, %p1791_p10 }
  0x3c   :  { %1799 = shalt.err (!%p1796_p12)
}
  0x3d   :  { %s1800_s20 = scalar_lea.vmem %s1961_s27, 2048  ;;  %p1805_p0 = scmp.lt.s32.totalorder %s1961_s27, %s1961_s27 }
  0x3e   :  { %p1801_p13 = scmp.ne.s32.totalorder %s1961_s27, %s1800_s20  ;;  %p1806_p1 = scmp.lt.s32.totalorder %s1800_s20, %s1800_s20 }
  0x40   :  { %p1807_p2 = por %p1806_p1, %p1805_p0 }
  0x42   :  { %p1808_p3 = pnand %p1807_p2, %p1801_p13 }
  0x44   :  { %1811 = shalt.err (!%p1808_p3)
}
  0x45   :  { %64 = dma.hbm_to_vmem [thread:$0]  %s2064_s3, 2048, %s1961_s27, [#allocation10], %s1892_s1, %s1892_s1, %s1893_s21  }
  0x46   :  { %1878 = dma.done.wait [#allocation4], 4096  }
  0x47   :  { %1879 = vsyncadd [#allocation4], 4294963200 }
  0x48   :  { %1880 = dma.done.wait [#allocation7], 6144  }
  0x49   :  { %1881 = vsyncadd [#allocation7], 4294961152 }
  0x4a   :  { %1882 = dma.done.wait [#allocation10], 2048  }
  0x4b   :  { %1883 = vsyncadd [#allocation10], 4294965248  ;;  %v1660_v0 = vld [vmem:[#allocation6 + $0x40] sm:$0xff]   ;;  %v1662_v2 = vld [vmem:[#allocation6 + $0x48] sm:$0xff]   ;;  %s1896_s3 = smov [#allocation11]  }
  0x4c   :  { %v1661_v1 = vld [vmem:[#allocation6] sm:$0xff]   ;;  %1361 = vmatprep.subr.bf16.mxu0 %v1660_v0  ;;  %1633 = vmatprep.subr.bf16.mxu1 %v1660_v0  ;;  %v1663_v3 = vld [vmem:[#allocation6 + $0x8] sm:$0xff]   ;;  %v1664_v4 = vld [vmem:[#allocation6 + $0x50] sm:$0xff]   ;;  %s1272_s23 = sshll.u32 %s1896_s3, 4  ;;  %s1273_s23 = int_to_ptr.vmem [resolvable:$true] %s1272_s23 }
  0x4d   :  { %1362 = vmatpush3.bf16.msra.mxu0 %v1661_v1  ;;  %1641 = vmatpush3.bf16.msra.mxu1 %v1661_v1  ;;  %v1665_v5 = vld [vmem:[#allocation6 + $0x10] sm:$0xff]   ;;  %v1666_v6 = vld [vmem:[#allocation6 + $0x58] sm:$0xff]   ;;  %v1668_v8 = vld [vmem:[#allocation6 + $0x60] sm:$0xff]   ;;  %s1812_s24 = scalar_lea.vmem %s1273_s23, 4096  ;;  %p1817_p5 = scmp.lt.s32.totalorder %s1273_s23, %s1273_s23 }
  0x4e   :  { %1363 = vmatprep.subr.bf16.mxu0 %v1662_v2  ;;  %1634 = vmatprep.subr.bf16.mxu1 %v1662_v2  ;;  %v1667_v7 = vld [vmem:[#allocation6 + $0x18] sm:$0xff]   ;;  %v1669_v9 = vld [vmem:[#allocation6 + $0x20] sm:$0xff]   ;;  %v1670_v10 = vld [vmem:[#allocation6 + $0x68] sm:$0xff]   ;;  %p1813_p4 = scmp.ne.s32.totalorder %s1273_s23, %s1812_s24  ;;  %p1818_p6 = scmp.lt.s32.totalorder %s1812_s24, %s1812_s24 }
  0x4f   :  { %v1678_v11 = vld [vmem:[#allocation3 + $0x4] ss:$8 sps:$4 sm:$0xff]   ;;  %v1672_v13 = vld [vmem:[#allocation6 + $0x70] sm:$0xff]   ;;  %v1674_v15 = vld [vmem:[#allocation6 + $0x78] sm:$0xff]  }
  0x50   :  { %v1671_v12 = vld [vmem:[#allocation6 + $0x28] sm:$0xff]   ;;  %498 = vmatprep.mubr.bf16.mxu0 %v1678_v11  ;;  %v1673_v14 = vld [vmem:[#allocation6 + $0x30] sm:$0xff]   ;;  %v1675_v16 = vld [vmem:[#allocation6 + $0x38] sm:$0xff]   ;;  %p1819_p7 = por %p1818_p6, %p1817_p5 }
  0x51   :  { %1364 = vmatpush3.bf16.msra.mxu0 %v1663_v3  ;;  %1642 = vmatpush3.bf16.msra.mxu1 %v1663_v3  ;;  %v1676_v17 = vld [vmem:[#allocation3] ss:$8 sps:$4 sm:$0xff]   ;;  %v1708_v18 = vld [vmem:[#allocation3 + $0xc4] ss:$8 sps:$4 sm:$0xff]   ;;  %v1679_v19 = vld [vmem:[#allocation3 + $0x14] ss:$8 sps:$4 sm:$0xff]  }
  0x52   :  { %1365 = vmatprep.subr.bf16.mxu0 %v1664_v4  ;;  %1635 = vmatprep.subr.bf16.mxu1 %v1664_v4  ;;  %v1706_v20 = vld [vmem:[#allocation3 + $0xc0] ss:$8 sps:$4 sm:$0xff]   ;;  %v1712_v21 = vld [vmem:[#allocation3 + $0xd4] ss:$8 sps:$4 sm:$0xff]   ;;  %v1681_v22 = vld [vmem:[#allocation3 + $0x10] ss:$8 sps:$4 sm:$0xff]   ;;  %p1820_p8 = pnand %p1819_p7, %p1813_p4 }
  0x53   :  { %594 = vmatprep.mubr.bf16.mxu1 %v1708_v18  ;;  %v854_v23 = vld [vmem:[#allocation9] sm:$0xff]  ;;  %v855_v24 = vld [vmem:[#allocation9 + $0x8] sm:$0xff]  ;;  %v856_v27 = vld [vmem:[#allocation9 + $0x10] sm:$0xff] }
  0x54   :  { %v1682_v25 = vld [vmem:[#allocation3 + $0x24] ss:$8 sps:$4 sm:$0xff]   ;;  %v1601_v26 = vpack.c.bf16 %v855_v24, %v854_v23  ;;  %v857_v28 = vld [vmem:[#allocation9 + $0x18] sm:$0xff]  ;;  %v860_v35 = vld [vmem:[#allocation9 + $0x30] sm:$0xff] }
  0x55   :  { %1366 = vmatpush3.bf16.msra.mxu0 %v1665_v5  ;;  %1643 = vmatpush3.bf16.msra.mxu1 %v1665_v5  ;;  %v1714_v29 = vld [vmem:[#allocation3 + $0xd0] ss:$8 sps:$4 sm:$0xff]   ;;  %v1605_v30 = vpack.c.bf16 %v857_v28, %v856_v27  ;;  %v858_v31 = vld [vmem:[#allocation9 + $0x20] sm:$0xff]  ;;  %v859_v32 = vld [vmem:[#allocation9 + $0x28] sm:$0xff] }
  0x56   :  { %1367 = vmatprep.subr.bf16.mxu0 %v1666_v6  ;;  %1636 = vmatprep.subr.bf16.mxu1 %v1666_v6  ;;  %v1718_v33 = vld [vmem:[#allocation3 + $0xe4] ss:$8 sps:$4 sm:$0xff]   ;;  %v1609_v34 = vpack.c.bf16 %v859_v32, %v858_v31  ;;  %v861_v36 = vld [vmem:[#allocation9 + $0x38] sm:$0xff]  ;;  %v1684_v37 = vld [vmem:[#allocation3 + $0x20] ss:$8 sps:$4 sm:$0xff]  }
  0x57   :  { %v1685_v38 = vld [vmem:[#allocation3 + $0x34] ss:$8 sps:$4 sm:$0xff]   ;;  %v1613_v39 = vpack.c.bf16 %v861_v36, %v860_v35  ;;  %v1720_v40 = vld [vmem:[#allocation3 + $0xe0] ss:$8 sps:$4 sm:$0xff]   ;;  %v1687_v47 = vld [vmem:[#allocation3 + $0x30] ss:$8 sps:$4 sm:$0xff]  }
  0x58   :  { %v862_v41 = vld [vmem:[#allocation9 + $0x40] sm:$0xff]  ;;  %v863_v42 = vld [vmem:[#allocation9 + $0x48] sm:$0xff]  ;;  %v1721_v43 = vld [vmem:[#allocation3 + $0xf4] ss:$8 sps:$4 sm:$0xff]  }
  0x59   :  { %1368 = vmatpush3.bf16.msra.mxu0 %v1667_v7  ;;  %1644 = vmatpush3.bf16.msra.mxu1 %v1667_v7  ;;  %v1617_v44 = vpack.c.bf16 %v863_v42, %v862_v41  ;;  %v864_v45 = vld [vmem:[#allocation9 + $0x50] sm:$0xff]  ;;  %v865_v46 = vld [vmem:[#allocation9 + $0x58] sm:$0xff]  ;;  %v1688_v49 = vld [vmem:[#allocation3 + $0x44] ss:$8 sps:$4 sm:$0xff]  }
  0x5a   :  { %1369 = vmatprep.subr.bf16.mxu0 %v1668_v8  ;;  %1637 = vmatprep.subr.bf16.mxu1 %v1668_v8  ;;  %v1621_v48 = vpack.c.bf16 %v865_v46, %v864_v45  ;;  %v1723_v50 = vld [vmem:[#allocation3 + $0xf0] ss:$8 sps:$4 sm:$0xff]   ;;  %v1690_v51 = vld [vmem:[#allocation3 + $0x40] ss:$8 sps:$4 sm:$0xff]   ;;  %v1691_v52 = vld [vmem:[#allocation3 + $0x54] ss:$8 sps:$4 sm:$0xff]  }
  0x5b   :  { %v1693_v53 = vld [vmem:[#allocation3 + $0x50] ss:$8 sps:$4 sm:$0xff]   ;;  %v1694_v54 = vld [vmem:[#allocation3 + $0x64] ss:$8 sps:$4 sm:$0xff]   ;;  %v1696_v55 = vld [vmem:[#allocation3 + $0x60] ss:$8 sps:$4 sm:$0xff]  }
  0x5c   :  { %v1697_v56 = vld [vmem:[#allocation3 + $0x74] ss:$8 sps:$4 sm:$0xff]   ;;  %v1699_v57 = vld [vmem:[#allocation3 + $0x70] ss:$8 sps:$4 sm:$0xff]   ;;  %v1700_v58 = vld [vmem:[#allocation3 + $0x84] ss:$8 sps:$4 sm:$0xff]  }
  0x5d   :  { %1370 = vmatpush3.bf16.msra.mxu0 %v1669_v9  ;;  %1645 = vmatpush3.bf16.msra.mxu1 %v1669_v9  ;;  %v1702_v59 = vld [vmem:[#allocation3 + $0x80] ss:$8 sps:$4 sm:$0xff]   ;;  %v1703_v60 = vld [vmem:[#allocation3 + $0x94] ss:$8 sps:$4 sm:$0xff]   ;;  %v1705_v61 = vld [vmem:[#allocation3 + $0x90] ss:$8 sps:$4 sm:$0xff]  }
  0x5e   :  { %1371 = vmatprep.subr.bf16.mxu0 %v1670_v10  ;;  %1638 = vmatprep.subr.bf16.mxu1 %v1670_v10  ;;  %v1709_v62 = vld [vmem:[#allocation3 + $0xa4] ss:$8 sps:$4 sm:$0xff]   ;;  %v1711_v63 = vld [vmem:[#allocation3 + $0xa0] ss:$8 sps:$4 sm:$0xff]   ;;  %v1715_v0 = vld [vmem:[#allocation3 + $0xb4] ss:$8 sps:$4 sm:$0xff]  }
  0x5f   :  { %v866_v1 = vld [vmem:[#allocation9 + $0x60] sm:$0xff]  ;;  %v867_v2 = vld [vmem:[#allocation9 + $0x68] sm:$0xff]  ;;  %v1717_v4 = vld [vmem:[#allocation3 + $0xb0] ss:$8 sps:$4 sm:$0xff]  }
  0x60   :  { %v1625_v3 = vpack.c.bf16 %v867_v2, %v866_v1  ;;  %v868_v5 = vld [vmem:[#allocation9 + $0x70] sm:$0xff]  ;;  %v869_v6 = vld [vmem:[#allocation9 + $0x78] sm:$0xff]  ;;  %v758_v8 = vld [vmem:[#allocation8] sm:$0xff] }
  0x61   :  { %1372 = vmatpush3.bf16.msra.mxu0 %v1671_v12  ;;  %1646 = vmatpush3.bf16.msra.mxu1 %v1671_v12  ;;  %v1629_v7 = vpack.c.bf16 %v869_v6, %v868_v5  ;;  %v759_v11 = vld [vmem:[#allocation8 + $0x8] sm:$0xff]  ;;  %v760_v27 = vld [vmem:[#allocation8 + $0x10] sm:$0xff]  ;;  %v761_v31 = vld [vmem:[#allocation8 + $0x18] sm:$0xff] }
  0x62   :  { %1373 = vmatprep.subr.bf16.mxu0 %v1672_v13  ;;  %1639 = vmatprep.subr.bf16.mxu1 %v1672_v13  ;;  %v793_v42 = vmul.f32 0.1, %v761_v31 }
  0x65   :  { %1374 = vmatpush3.bf16.msra.mxu0 %v1673_v14  ;;  %1647 = vmatpush3.bf16.msra.mxu1 %v1673_v14  ;;  %v790_v14 = vmul.f32 0.1, %v758_v8 }
  0x66   :  { %1375 = vmatprep.subr.bf16.mxu0 %v1674_v15  ;;  %1640 = vmatprep.subr.bf16.mxu1 %v1674_v15 }
  0x69   :  { %1376 = vmatpush3.bf16.msra.mxu0 %v1675_v16  ;;  %1648 = vmatpush3.bf16.msra.mxu1 %v1675_v16 }
  0x6a   :  { %1602 = vmatprep.subr.bf16.mxu1 %v1601_v26 }
  0x6c   :  { %499 = vmatmul.mubr.bf16.vlgmr.msra.gmra.mrb[0].mxu0 %v1676_v17  ;;  %595 = vmatmul.mubr.bf16.vlgmr.msra.gmra.mrb[0].mxu1 %v1706_v20 }
  0x6d   :  { %506 = vmatprep.mubr.bf16.mxu0 %v1679_v19  ;;  %602 = vmatprep.mubr.bf16.mxu1 %v1712_v21 }
  0x6e   :  { %1604 = vmatpush3.bf16.msra.mxu1 %v1601_v26 }
  0x6f   :  { %1606 = vmatprep.subr.bf16.mxu1 %v1605_v30 }
  0x72   :  { %1608 = vmatpush3.bf16.msra.mxu1 %v1605_v30 }
  0x73   :  { %1610 = vmatprep.subr.bf16.mxu1 %v1609_v34 }
  0x74   :  { %507 = vmatmul.mubr.bf16.gmra.mrb[4].mxu0 %v1681_v22  ;;  %603 = vmatmul.mubr.bf16.gmra.mrb[4].mxu1 %v1714_v29  ;;  %v791_v22 = vmul.f32 0.1, %v759_v11 }
  0x75   :  { %514 = vmatprep.mubr.bf16.mxu0 %v1682_v25  ;;  %610 = vmatprep.mubr.bf16.mxu1 %v1718_v33 }
  0x76   :  { %1612 = vmatpush3.bf16.msra.mxu1 %v1609_v34  ;;  %v792_v34 = vmul.f32 0.1, %v760_v27 }
  0x77   :  { %1614 = vmatprep.subr.bf16.mxu1 %v1613_v39 }
  0x7a   :  { %1616 = vmatpush3.bf16.msra.mxu1 %v1613_v39 }
  0x7b   :  { %1618 = vmatprep.subr.bf16.mxu1 %v1617_v44 }
  0x7c   :  { %515 = vmatmul.mubr.bf16.gmra.mrb[8].mxu0 %v1684_v37  ;;  %611 = vmatmul.mubr.bf16.gmra.mrb[8].mxu1 %v1720_v40 }
  0x7d   :  { %522 = vmatprep.mubr.bf16.mxu0 %v1685_v38  ;;  %618 = vmatprep.mubr.bf16.mxu1 %v1721_v43 }
  0x7e   :  { %1620 = vmatpush3.bf16.msra.mxu1 %v1617_v44 }
  0x7f   :  { %1622 = vmatprep.subr.bf16.mxu1 %v1621_v48 }
  0x82   :  { %1624 = vmatpush3.bf16.msra.mxu1 %v1621_v48 }
  0x83   :  { %1626 = vmatprep.subr.bf16.mxu1 %v1625_v3 }
  0x84   :  { %523 = vmatmul.mubr.bf16.gmra.mrb[12].mxu0 %v1687_v47  ;;  %619 = vmatmul.mubr.bf16.gmra.mrb[12].mxu1 %v1723_v50  ;;  %v762_v47 = vld [vmem:[#allocation8 + $0x20] sm:$0xff] }
  0x85   :  { %530 = vmatprep.mubr.bf16.mxu0 %v1688_v49 }
  0x86   :  { %1628 = vmatpush3.bf16.msra.mxu1 %v1625_v3  ;;  %v764_v3 = vld [vmem:[#allocation8 + $0x30] sm:$0xff] }
  0x87   :  { %1630 = vmatprep.subr.bf16.mxu1 %v1629_v7 }
  0x8a   :  { %1632 = vmatpush3.bf16.msra.mxu1 %v1629_v7  ;;  %v765_v7 = vld [vmem:[#allocation8 + $0x38] sm:$0xff] }
  0x8c   :  { %531 = vmatmul.mubr.bf16.gmra.mrb[16].mxu0 %v1690_v51  ;;  %v763_v51 = vld [vmem:[#allocation8 + $0x28] sm:$0xff] }
  0x8d   :  { %538 = vmatprep.mubr.bf16.mxu0 %v1691_v52 }
  0x94   :  { %539 = vmatmul.mubr.bf16.gmra.mrb[20].mxu0 %v1693_v53 }
  0x95   :  { %546 = vmatprep.mubr.bf16.mxu0 %v1694_v54  ;;  %v794_v54 = vmul.f32 0.1, %v762_v47 }
  0x9c   :  { %547 = vmatmul.mubr.bf16.gmra.mrb[24].mxu0 %v1696_v55 }
  0x9d   :  { %554 = vmatprep.mubr.bf16.mxu0 %v1697_v56 }
  0xa4   :  { %555 = vmatmul.mubr.bf16.gmra.mrb[28].mxu0 %v1699_v57 }
  0xa5   :  { %562 = vmatprep.mubr.bf16.mxu0 %v1700_v58 }
  0xac   :  { %563 = vmatmul.mubr.bf16.gmra.mrb[32].mxu0 %v1702_v59 }
  0xad   :  { %570 = vmatprep.mubr.bf16.mxu0 %v1703_v60 }
  0xb4   :  { %571 = vmatmul.mubr.bf16.gmra.mrb[36].mxu0 %v1705_v61 }
  0xb5   :  { %578 = vmatprep.mubr.bf16.mxu0 %v1709_v62  ;;  %v795_v62 = vmul.f32 0.1, %v763_v51 }
  0xbc   :  { %579 = vmatmul.mubr.bf16.gmra.mrb[40].mxu0 %v1711_v63 }
  0xbd   :  { %586 = vmatprep.mubr.bf16.mxu0 %v1715_v0 }
  0xc4   :  { %587 = vmatmul.mubr.bf16.gmra.mrb[44].mxu0 %v1717_v4 }
 0x13f   :  { %v1377_v9 = vpop.f32.mrb[0].mxu0  ;;  %v1449_v12 = vpop.f32.mrb[0].mxu1 }
 0x140   :  { %v1378_v10 = vpop.f32.mrb[1].mxu0  ;;  %v1450_v16 = vpop.f32.mrb[1].mxu1 }
 0x141   :  { %v1379_v13 = vadd.f32 %v1378_v10, %v1377_v9  ;;  %v1380_v15 = vpop.f32.mrb[2].mxu0  ;;  %v1998_v18 = vadd.f32 %v1450_v16, %v1449_v12  ;;  %v1452_v19 = vpop.f32.mrb[2].mxu1  ;;  %v796_v10 = vmul.f32 0.1, %v764_v3 }
 0x142   :  { %v1381_v17 = vpop.f32.mrb[3].mxu0  ;;  %v1453_v23 = vpop.f32.mrb[3].mxu1 }
 0x143   :  { %v726_v20 = vmul.f32 0.9, %v1379_v13  ;;  %v1382_v21 = vadd.f32 %v1381_v17, %v1380_v15  ;;  %v2000_v24 = vadd.f32 %v1453_v23, %v1452_v19  ;;  %v797_v19 = vmul.f32 0.1, %v765_v7  ;;  %v772_v7 = vld [vmem:[#allocation8 + $0x70] sm:$0xff] }
 0x145   :  { %v822_v25 = vadd.f32 %v790_v14, %v726_v20  ;;  %v727_v26 = vmul.f32 0.9, %v1382_v21 }
 0x147   :  { %v823_v28 = vadd.f32 %v791_v22, %v727_v26  ;;  %v1383_v29 = vpop.f32.mrb[4].mxu0  ;;  %1553 = vmatprep.mubr.f32.mxu1 %v822_v25  ;;  %v1455_v32 = vpop.f32.mrb[4].mxu1  ;;  %v766_v25 = vld [vmem:[#allocation8 + $0x40] sm:$0xff] }
 0x148   :  { %v1384_v30 = vpop.f32.mrb[5].mxu0  ;;  %v1456_v36 = vpop.f32.mrb[5].mxu1  ;;  %v798_v31 = vmul.f32 0.1, %v766_v25  ;;  %v774_v25 = vld [vmem:[#allocation8 + $0x80] sm:$0xff] }
 0x149   :  { %v1385_v33 = vadd.f32 %v1384_v30, %v1383_v29  ;;  %v1386_v35 = vpop.f32.mrb[6].mxu0  ;;  %1554 = vmatmul.mubr.f32.vlgmr.msra.gmra.mrb[16].mxu1 %v823_v28  ;;  %v2002_v38 = vadd.f32 %v1456_v36, %v1455_v32  ;;  %v1458_v39 = vpop.f32.mrb[6].mxu1  ;;  %v767_v29 = vld [vmem:[#allocation8 + $0x48] sm:$0xff] }
 0x14a   :  { %v1387_v37 = vpop.f32.mrb[7].mxu0  ;;  %v1459_v43 = vpop.f32.mrb[7].mxu1  ;;  %v799_v36 = vmul.f32 0.1, %v767_v29  ;;  %v775_v29 = vld [vmem:[#allocation8 + $0x88] sm:$0xff] }
 0x14b   :  { %v728_v40 = vmul.f32 0.9, %v1385_v33  ;;  %v1388_v41 = vadd.f32 %v1387_v37, %v1386_v35  ;;  %v2004_v44 = vadd.f32 %v1459_v43, %v1458_v39 }
 0x14d   :  { %v824_v45 = vadd.f32 %v792_v34, %v728_v40  ;;  %v729_v46 = vmul.f32 0.9, %v1388_v41  ;;  %v768_v40 = vld [vmem:[#allocation8 + $0x50] sm:$0xff] }
 0x14e   :  { %v800_v47 = vmul.f32 0.1, %v768_v40  ;;  %v776_v40 = vld [vmem:[#allocation8 + $0x90] sm:$0xff] }
 0x14f   :  { %v825_v48 = vadd.f32 %v793_v42, %v729_v46  ;;  %v1389_v49 = vpop.f32.mrb[8].mxu0  ;;  %1556 = vmatprep.mubr.f32.mxu1 %v824_v45  ;;  %v1461_v52 = vpop.f32.mrb[8].mxu1  ;;  %v769_v45 = vld [vmem:[#allocation8 + $0x58] sm:$0xff] }
 0x150   :  { %v1390_v50 = vpop.f32.mrb[9].mxu0  ;;  %v1462_v56 = vpop.f32.mrb[9].mxu1 }
 0x151   :  { %v1391_v53 = vadd.f32 %v1390_v50, %v1389_v49  ;;  %v1392_v55 = vpop.f32.mrb[10].mxu0  ;;  %1557 = vmatmul.mubr.f32.gmra.mrb[18].mxu1 %v825_v48  ;;  %v2006_v58 = vadd.f32 %v1462_v56, %v1461_v52  ;;  %v1464_v59 = vpop.f32.mrb[10].mxu1  ;;  %v801_v52 = vmul.f32 0.1, %v769_v45  ;;  %v777_v45 = vld [vmem:[#allocation8 + $0x98] sm:$0xff] }
 0x152   :  { %v1393_v57 = vpop.f32.mrb[11].mxu0  ;;  %v1465_v63 = vpop.f32.mrb[11].mxu1 }
 0x153   :  { %v730_v60 = vmul.f32 0.9, %v1391_v53  ;;  %v1394_v61 = vadd.f32 %v1393_v57, %v1392_v55  ;;  %v2008_v0 = vadd.f32 %v1465_v63, %v1464_v59  ;;  %v770_v55 = vld [vmem:[#allocation8 + $0x60] sm:$0xff] }
 0x155   :  { %v826_v1 = vadd.f32 %v794_v54, %v730_v60  ;;  %v731_v2 = vmul.f32 0.9, %v1394_v61  ;;  %v771_v60 = vld [vmem:[#allocation8 + $0x68] sm:$0xff] }
 0x157   :  { %v827_v4 = vadd.f32 %v795_v62, %v731_v2  ;;  %v1395_v5 = vpop.f32.mrb[12].mxu0  ;;  %1559 = vmatprep.mubr.f32.mxu1 %v826_v1  ;;  %v1467_v8 = vpop.f32.mrb[12].mxu1  ;;  %v802_v62 = vmul.f32 0.1, %v770_v55  ;;  %v778_v55 = vld [vmem:[#allocation8 + $0xa0] sm:$0xff] }
 0x158   :  { %v1396_v6 = vpop.f32.mrb[13].mxu0  ;;  %v1468_v12 = vpop.f32.mrb[13].mxu1 }
 0x159   :  { %v1397_v9 = vadd.f32 %v1396_v6, %v1395_v5  ;;  %v1398_v11 = vpop.f32.mrb[14].mxu0  ;;  %1560 = vmatmul.mubr.f32.gmra.mrb[20].mxu1 %v827_v4  ;;  %v2010_v14 = vadd.f32 %v1468_v12, %v1467_v8  ;;  %v1470_v15 = vpop.f32.mrb[14].mxu1  ;;  %v803_v4 = vmul.f32 0.1, %v771_v60  ;;  %v779_v60 = vld [vmem:[#allocation8 + $0xa8] sm:$0xff] }
 0x15a   :  { %v1399_v13 = vpop.f32.mrb[15].mxu0  ;;  %v1471_v20 = vpop.f32.mrb[15].mxu1 }
 0x15b   :  { %v732_v16 = vmul.f32 0.9, %v1397_v9  ;;  %v1400_v17 = vadd.f32 %v1399_v13, %v1398_v11  ;;  %v2012_v21 = vadd.f32 %v1471_v20, %v1470_v15  ;;  %v773_v11 = vld [vmem:[#allocation8 + $0x78] sm:$0xff]  ;;  %v804_v13 = vmul.f32 0.1, %v772_v7  ;;  %v780_v7 = vld [vmem:[#allocation8 + $0xb0] sm:$0xff] }
 0x15c   :  { %v805_v20 = vmul.f32 0.1, %v773_v11  ;;  %v781_v11 = vld [vmem:[#allocation8 + $0xb8] sm:$0xff] }
 0x15d   :  { %v828_v22 = vadd.f32 %v796_v10, %v732_v16  ;;  %v733_v23 = vmul.f32 0.9, %v1400_v17 }
 0x15f   :  { %v829_v26 = vadd.f32 %v797_v19, %v733_v23  ;;  %v1401_v27 = vpop.f32.mrb[16].mxu0  ;;  %1562 = vmatprep.mubr.f32.mxu1 %v828_v22 }
 0x160   :  { %v1402_v28 = vpop.f32.mrb[17].mxu0 }
 0x161   :  { %v1403_v30 = vadd.f32 %v1402_v28, %v1401_v27  ;;  %v1404_v32 = vpop.f32.mrb[18].mxu0  ;;  %1563 = vmatmul.mubr.f32.gmra.mrb[22].mxu1 %v829_v26 }
 0x162   :  { %v1405_v33 = vpop.f32.mrb[19].mxu0 }
 0x163   :  { %v734_v34 = vmul.f32 0.9, %v1403_v30  ;;  %v1406_v35 = vadd.f32 %v1405_v33, %v1404_v32 }
 0x165   :  { %v830_v37 = vadd.f32 %v798_v31, %v734_v34  ;;  %v735_v39 = vmul.f32 0.9, %v1406_v35  ;;  %v806_v31 = vmul.f32 0.1, %v774_v25 }
 0x167   :  { %v831_v41 = vadd.f32 %v799_v36, %v735_v39  ;;  %v1407_v42 = vpop.f32.mrb[20].mxu0  ;;  %1565 = vmatprep.mubr.f32.mxu1 %v830_v37  ;;  %v807_v36 = vmul.f32 0.1, %v775_v29 }
 0x168   :  { %v1408_v43 = vpop.f32.mrb[21].mxu0 }
 0x169   :  { %v1409_v46 = vadd.f32 %v1408_v43, %v1407_v42  ;;  %v1410_v48 = vpop.f32.mrb[22].mxu0  ;;  %1566 = vmatmul.mubr.f32.gmra.mrb[24].mxu1 %v831_v41 }
 0x16a   :  { %v1411_v49 = vpop.f32.mrb[23].mxu0 }
 0x16b   :  { %v736_v50 = vmul.f32 0.9, %v1409_v46  ;;  %v1412_v51 = vadd.f32 %v1411_v49, %v1410_v48 }
 0x16d   :  { %v832_v53 = vadd.f32 %v800_v47, %v736_v50  ;;  %v737_v54 = vmul.f32 0.9, %v1412_v51  ;;  %v808_v47 = vmul.f32 0.1, %v776_v40 }
 0x16f   :  { %v833_v56 = vadd.f32 %v801_v52, %v737_v54  ;;  %v1413_v57 = vpop.f32.mrb[24].mxu0  ;;  %1568 = vmatprep.mubr.f32.mxu1 %v832_v53  ;;  %v809_v52 = vmul.f32 0.1, %v777_v45  ;;  %v787_v45 = vld [vmem:[#allocation8 + $0xe8] sm:$0xff] }
 0x170   :  { %v1414_v59 = vpop.f32.mrb[25].mxu0 }
 0x171   :  { %v1415_v61 = vadd.f32 %v1414_v59, %v1413_v57  ;;  %v1416_v63 = vpop.f32.mrb[26].mxu0  ;;  %1569 = vmatmul.mubr.f32.gmra.mrb[26].mxu1 %v833_v56 }
 0x172   :  { %v1417_v1 = vpop.f32.mrb[27].mxu0 }
 0x173   :  { %v738_v2 = vmul.f32 0.9, %v1415_v61  ;;  %v1418_v3 = vadd.f32 %v1417_v1, %v1416_v63 }
 0x175   :  { %v834_v5 = vadd.f32 %v802_v62, %v738_v2  ;;  %v739_v6 = vmul.f32 0.9, %v1418_v3  ;;  %v810_v62 = vmul.f32 0.1, %v778_v55 }
 0x177   :  { %v835_v8 = vadd.f32 %v803_v4, %v739_v6  ;;  %v1419_v9 = vpop.f32.mrb[28].mxu0  ;;  %1571 = vmatprep.mubr.f32.mxu1 %v834_v5  ;;  %v811_v4 = vmul.f32 0.1, %v779_v60 }
 0x178   :  { %v1420_v10 = vpop.f32.mrb[29].mxu0 }
 0x179   :  { %v1421_v12 = vadd.f32 %v1420_v10, %v1419_v9  ;;  %v1422_v15 = vpop.f32.mrb[30].mxu0  ;;  %1572 = vmatmul.mubr.f32.gmra.mrb[28].mxu1 %v835_v8 }
 0x17a   :  { %v1423_v16 = vpop.f32.mrb[31].mxu0 }
 0x17b   :  { %v740_v17 = vmul.f32 0.9, %v1421_v12  ;;  %v1424_v19 = vadd.f32 %v1423_v16, %v1422_v15  ;;  %v782_v12 = vld [vmem:[#allocation8 + $0xc0] sm:$0xff]  ;;  %v812_v15 = vmul.f32 0.1, %v780_v7 }
 0x17c   :  { %v814_v25 = vmul.f32 0.1, %v782_v12 }
 0x17d   :  { %v836_v22 = vadd.f32 %v804_v13, %v740_v17  ;;  %v741_v23 = vmul.f32 0.9, %v1424_v19 }
 0x17f   :  { %v837_v26 = vadd.f32 %v805_v20, %v741_v23  ;;  %v1425_v27 = vpop.f32.mrb[32].mxu0  ;;  %1574 = vmatprep.mubr.f32.mxu1 %v836_v22  ;;  %v813_v22 = vmul.f32 0.1, %v781_v11  ;;  %v750_v23 = vmul.f32 0.9, %v1998_v18 }
 0x180   :  { %v1426_v28 = vpop.f32.mrb[33].mxu0  ;;  %v753_v18 = vmul.f32 0.9, %v2004_v44 }
 0x181   :  { %v1427_v30 = vadd.f32 %v1426_v28, %v1425_v27  ;;  %v1428_v32 = vpop.f32.mrb[34].mxu0  ;;  %1575 = vmatmul.mubr.f32.gmra.mrb[30].mxu1 %v837_v26  ;;  %v783_v26 = vld [vmem:[#allocation8 + $0xc8] sm:$0xff]  ;;  %v784_v27 = vld [vmem:[#allocation8 + $0xd0] sm:$0xff] }
 0x182   :  { %v1429_v33 = vpop.f32.mrb[35].mxu0 }
 0x183   :  { %v742_v34 = vmul.f32 0.9, %v1427_v30  ;;  %v1430_v35 = vadd.f32 %v1429_v33, %v1428_v32  ;;  %v751_v30 = vmul.f32 0.9, %v2000_v24  ;;  %v846_v33 = vadd.f32 %v814_v25, %v750_v23 }
 0x185   :  { %v838_v37 = vadd.f32 %v806_v31, %v742_v34  ;;  %v743_v39 = vmul.f32 0.9, %v1430_v35  ;;  %v815_v31 = vmul.f32 0.1, %v783_v26  ;;  %v752_v34 = vmul.f32 0.9, %v2002_v38 }
 0x186   :  { %v816_v35 = vmul.f32 0.1, %v784_v27 }
 0x187   :  { %v839_v41 = vadd.f32 %v807_v36, %v743_v39  ;;  %v1431_v42 = vpop.f32.mrb[36].mxu0  ;;  %1577 = vmatprep.mubr.f32.mxu1 %v838_v37  ;;  %v785_v36 = vld [vmem:[#allocation8 + $0xd8] sm:$0xff]  ;;  %v786_v37 = vld [vmem:[#allocation8 + $0xe0] sm:$0xff]  ;;  %v847_v39 = vadd.f32 %v815_v31, %v751_v30 }
 0x188   :  { %v1432_v43 = vpop.f32.mrb[37].mxu0  ;;  %v817_v40 = vmul.f32 0.1, %v785_v36  ;;  %v818_v24 = vmul.f32 0.1, %v786_v37 }
 0x189   :  { %v1433_v46 = vadd.f32 %v1432_v43, %v1431_v42  ;;  %v1434_v48 = vpop.f32.mrb[38].mxu0  ;;  %1578 = vmatmul.mubr.f32.gmra.mrb[32].mxu1 %v839_v41  ;;  %v788_v41 = vld [vmem:[#allocation8 + $0xf0] sm:$0xff]  ;;  %v848_v42 = vadd.f32 %v816_v35, %v752_v34  ;;  %v754_v43 = vmul.f32 0.9, %v2006_v58 }
 0x18a   :  { %v1435_v49 = vpop.f32.mrb[39].mxu0  ;;  %v849_v38 = vadd.f32 %v817_v40, %v753_v18 }
 0x18b   :  { %v744_v50 = vmul.f32 0.9, %v1433_v46  ;;  %v1436_v51 = vadd.f32 %v1435_v49, %v1434_v48  ;;  %v756_v46 = vmul.f32 0.9, %v2010_v14  ;;  %v755_v48 = vmul.f32 0.9, %v2008_v0 }
 0x18c   :  { %v819_v49 = vmul.f32 0.1, %v787_v45 }
 0x18d   :  { %v840_v53 = vadd.f32 %v808_v47, %v744_v50  ;;  %v745_v54 = vmul.f32 0.9, %v1436_v51  ;;  %v820_v47 = vmul.f32 0.1, %v788_v41  ;;  %v850_v50 = vadd.f32 %v818_v24, %v754_v43  ;;  %v789_v51 = vld [vmem:[#allocation8 + $0xf8] sm:$0xff] }
 0x18e   :  { %v821_v58 = vmul.f32 0.1, %v789_v51 }
 0x18f   :  { %v841_v56 = vadd.f32 %v809_v52, %v745_v54  ;;  %v1437_v57 = vpop.f32.mrb[40].mxu0  ;;  %1580 = vmatprep.mubr.f32.mxu1 %v840_v53  ;;  %v852_v44 = vadd.f32 %v820_v47, %v756_v46  ;;  %v851_v52 = vadd.f32 %v819_v49, %v755_v48  ;;  %v757_v53 = vmul.f32 0.9, %v2012_v21 }
 0x190   :  { %v1438_v59 = vpop.f32.mrb[41].mxu0 }
 0x191   :  { %v1439_v61 = vadd.f32 %v1438_v59, %v1437_v57  ;;  %v1440_v63 = vpop.f32.mrb[42].mxu0  ;;  %1581 = vmatmul.mubr.f32.gmra.mrb[34].mxu1 %v841_v56  ;;  %v853_v54 = vadd.f32 %v821_v58, %v757_v53 }
 0x192   :  { %v1441_v1 = vpop.f32.mrb[43].mxu0 }
 0x193   :  { %v746_v2 = vmul.f32 0.9, %v1439_v61  ;;  %v1442_v3 = vadd.f32 %v1441_v1, %v1440_v63 }
 0x195   :  { %v842_v5 = vadd.f32 %v810_v62, %v746_v2  ;;  %v747_v6 = vmul.f32 0.9, %v1442_v3 }
 0x197   :  { %v843_v8 = vadd.f32 %v811_v4, %v747_v6  ;;  %v1443_v9 = vpop.f32.mrb[44].mxu0  ;;  %1583 = vmatprep.mubr.f32.mxu1 %v842_v5 }
 0x198   :  { %v1444_v10 = vpop.f32.mrb[45].mxu0 }
 0x199   :  { %v1445_v13 = vadd.f32 %v1444_v10, %v1443_v9  ;;  %v1446_v16 = vpop.f32.mrb[46].mxu0  ;;  %1584 = vmatmul.mubr.f32.gmra.mrb[36].mxu1 %v843_v8 }
 0x19a   :  { %v1447_v17 = vpop.f32.mrb[47].mxu0 }
 0x19b   :  { %v748_v19 = vmul.f32 0.9, %v1445_v13  ;;  %v1448_v20 = vadd.f32 %v1447_v17, %v1446_v16 }
 0x19d   :  { %v844_v28 = vadd.f32 %v812_v15, %v748_v19  ;;  %v749_v29 = vmul.f32 0.9, %v1448_v20 }
 0x19f   :  { %v845_v32 = vadd.f32 %v813_v22, %v749_v29  ;;  %1586 = vmatprep.mubr.f32.mxu1 %v844_v28 }
 0x1a1   :  { %1587 = vmatmul.mubr.f32.gmra.mrb[38].mxu1 %v845_v32 }
 0x1a2   :  { %1589 = vmatprep.mubr.f32.mxu1 %v846_v33 }
 0x1a5   :  { %1590 = vmatmul.mubr.f32.gmra.mrb[40].mxu1 %v847_v39 }
 0x1a6   :  { %1592 = vmatprep.mubr.f32.mxu1 %v848_v42 }
 0x1a9   :  { %1593 = vmatmul.mubr.f32.gmra.mrb[42].mxu1 %v849_v38 }
 0x1aa   :  { %1595 = vmatprep.mubr.f32.mxu1 %v850_v50 }
 0x1ad   :  { %1596 = vmatmul.mubr.f32.gmra.mrb[44].mxu1 %v851_v52 }
 0x1ae   :  { %1598 = vmatprep.mubr.f32.mxu1 %v852_v44 }
 0x1b1   :  { %1599 = vmatmul.mubr.f32.gmra.mrb[46].mxu1 %v853_v54 }
 0x21c   :  { %v1555_v14 = vpop.f32.mrb[16].mxu1 }
 0x21d   :  { %v1096_v55 = vmax.f32 %v1555_v14, 0.0  ;;  %v936_v56 = vpop.f32.mrb[17].mxu1 }
 0x21e   :  { %v1095_v57 = vmax.f32 %v936_v56, 0.0 }
 0x21f   :  { %1128 = vst [vmem:[#allocation11 + $0x8] sm:$0xff] %v1096_v55  ;;  %v1197_v0 = vmul.f32 %v1096_v55, %v1096_v55 }
 0x220   :  { %1127 = vst [vmem:[#allocation11] sm:$0xff] %v1095_v57  ;;  %v1159_v59 = vadd.f32 %v1096_v55, %v1095_v57  ;;  %v1196_v60 = vmul.f32 %v1095_v57, %v1095_v57 }
 0x222   :  { %v1228_v61 = vadd.f32 %v1197_v0, %v1196_v60 }
 0x224   :  { %v1558_v62 = vpop.f32.mrb[18].mxu1 }
 0x225   :  { %v1098_v63 = vmax.f32 %v1558_v62, 0.0  ;;  %v946_v1 = vpop.f32.mrb[19].mxu1 }
 0x226   :  { %v1097_v2 = vmax.f32 %v946_v1, 0.0 }
 0x227   :  { %1130 = vst [vmem:[#allocation11 + $0x18] sm:$0xff] %v1098_v63  ;;  %v1199_v4 = vmul.f32 %v1098_v63, %v1098_v63 }
 0x228   :  { %1129 = vst [vmem:[#allocation11 + $0x10] sm:$0xff] %v1097_v2  ;;  %v1160_v21 = vadd.f32 %v1159_v59, %v1097_v2  ;;  %v1198_v3 = vmul.f32 %v1097_v2, %v1097_v2 }
 0x22a   :  { %v1229_v5 = vadd.f32 %v1228_v61, %v1198_v3  ;;  %v1161_v6 = vadd.f32 %v1160_v21, %v1098_v63 }
 0x22c   :  { %v1561_v7 = vpop.f32.mrb[20].mxu1  ;;  %v1230_v8 = vadd.f32 %v1229_v5, %v1199_v4 }
 0x22d   :  { %v1100_v9 = vmax.f32 %v1561_v7, 0.0  ;;  %v956_v10 = vpop.f32.mrb[21].mxu1 }
 0x22e   :  { %v1099_v11 = vmax.f32 %v956_v10, 0.0 }
 0x22f   :  { %1132 = vst [vmem:[#allocation11 + $0x28] sm:$0xff] %v1100_v9  ;;  %v1201_v15 = vmul.f32 %v1100_v9, %v1100_v9 }
 0x230   :  { %1131 = vst [vmem:[#allocation11 + $0x20] sm:$0xff] %v1099_v11  ;;  %v1162_v12 = vadd.f32 %v1161_v6, %v1099_v11  ;;  %v1200_v13 = vmul.f32 %v1099_v11, %v1099_v11 }
 0x232   :  { %v1231_v16 = vadd.f32 %v1230_v8, %v1200_v13  ;;  %v1163_v17 = vadd.f32 %v1162_v12, %v1100_v9 }
 0x234   :  { %v1564_v19 = vpop.f32.mrb[22].mxu1  ;;  %v1232_v20 = vadd.f32 %v1231_v16, %v1201_v15 }
 0x235   :  { %v1102_v22 = vmax.f32 %v1564_v19, 0.0  ;;  %v966_v23 = vpop.f32.mrb[23].mxu1 }
 0x236   :  { %v1101_v25 = vmax.f32 %v966_v23, 0.0 }
 0x237   :  { %1134 = vst [vmem:[#allocation11 + $0x38] sm:$0xff] %v1102_v22  ;;  %v1203_v28 = vmul.f32 %v1102_v22, %v1102_v22 }
 0x238   :  { %1133 = vst [vmem:[#allocation11 + $0x30] sm:$0xff] %v1101_v25  ;;  %v1164_v26 = vadd.f32 %v1163_v17, %v1101_v25  ;;  %v1202_v27 = vmul.f32 %v1101_v25, %v1101_v25 }
 0x23a   :  { %v1233_v29 = vadd.f32 %v1232_v20, %v1202_v27  ;;  %v1165_v30 = vadd.f32 %v1164_v26, %v1102_v22 }
 0x23c   :  { %v1567_v31 = vpop.f32.mrb[24].mxu1  ;;  %v1234_v32 = vadd.f32 %v1233_v29, %v1203_v28 }
 0x23d   :  { %v1104_v33 = vmax.f32 %v1567_v31, 0.0  ;;  %v976_v34 = vpop.f32.mrb[25].mxu1 }
 0x23e   :  { %v1103_v35 = vmax.f32 %v976_v34, 0.0 }
 0x23f   :  { %1136 = vst [vmem:[#allocation11 + $0x48] sm:$0xff] %v1104_v33  ;;  %v1205_v39 = vmul.f32 %v1104_v33, %v1104_v33 }
 0x240   :  { %1135 = vst [vmem:[#allocation11 + $0x40] sm:$0xff] %v1103_v35  ;;  %v1166_v36 = vadd.f32 %v1165_v30, %v1103_v35  ;;  %v1204_v37 = vmul.f32 %v1103_v35, %v1103_v35 }
 0x242   :  { %v1235_v18 = vadd.f32 %v1234_v32, %v1204_v37  ;;  %v1167_v40 = vadd.f32 %v1166_v36, %v1104_v33 }
 0x244   :  { %v1570_v41 = vpop.f32.mrb[26].mxu1  ;;  %v1236_v42 = vadd.f32 %v1235_v18, %v1205_v39 }
 0x245   :  { %v1106_v43 = vmax.f32 %v1570_v41, 0.0  ;;  %v986_v24 = vpop.f32.mrb[27].mxu1 }
 0x246   :  { %v1105_v45 = vmax.f32 %v986_v24, 0.0 }
 0x247   :  { %1138 = vst [vmem:[#allocation11 + $0x58] sm:$0xff] %v1106_v43  ;;  %v1207_v38 = vmul.f32 %v1106_v43, %v1106_v43 }
 0x248   :  { %1137 = vst [vmem:[#allocation11 + $0x50] sm:$0xff] %v1105_v45  ;;  %v1168_v46 = vadd.f32 %v1167_v40, %v1105_v45  ;;  %v1206_v47 = vmul.f32 %v1105_v45, %v1105_v45 }
 0x24a   :  { %v1237_v48 = vadd.f32 %v1236_v42, %v1206_v47  ;;  %v1169_v49 = vadd.f32 %v1168_v46, %v1106_v43 }
 0x24c   :  { %v1573_v50 = vpop.f32.mrb[28].mxu1  ;;  %v1238_v51 = vadd.f32 %v1237_v48, %v1207_v38 }
 0x24d   :  { %v1108_v44 = vmax.f32 %v1573_v50, 0.0  ;;  %v996_v52 = vpop.f32.mrb[29].mxu1 }
 0x24e   :  { %v1107_v53 = vmax.f32 %v996_v52, 0.0 }
 0x24f   :  { %1140 = vst [vmem:[#allocation11 + $0x68] sm:$0xff] %v1108_v44  ;;  %v1209_v14 = vmul.f32 %v1108_v44, %v1108_v44 }
 0x250   :  { %1139 = vst [vmem:[#allocation11 + $0x60] sm:$0xff] %v1107_v53  ;;  %v1170_v58 = vadd.f32 %v1169_v49, %v1107_v53  ;;  %v1208_v54 = vmul.f32 %v1107_v53, %v1107_v53 }
 0x252   :  { %v1239_v55 = vadd.f32 %v1238_v51, %v1208_v54  ;;  %v1171_v56 = vadd.f32 %v1170_v58, %v1108_v44 }
 0x254   :  { %v1576_v57 = vpop.f32.mrb[30].mxu1  ;;  %v1240_v0 = vadd.f32 %v1239_v55, %v1209_v14 }
 0x255   :  { %v1110_v59 = vmax.f32 %v1576_v57, 0.0  ;;  %v1006_v60 = vpop.f32.mrb[31].mxu1 }
 0x256   :  { %v1109_v61 = vmax.f32 %v1006_v60, 0.0 }
 0x257   :  { %1142 = vst [vmem:[#allocation11 + $0x78] sm:$0xff] %v1110_v59  ;;  %v1211_v1 = vmul.f32 %v1110_v59, %v1110_v59 }
 0x258   :  { %1141 = vst [vmem:[#allocation11 + $0x70] sm:$0xff] %v1109_v61  ;;  %v1172_v62 = vadd.f32 %v1171_v56, %v1109_v61  ;;  %v1210_v63 = vmul.f32 %v1109_v61, %v1109_v61 }
 0x25a   :  { %v1241_v2 = vadd.f32 %v1240_v0, %v1210_v63  ;;  %v1173_v21 = vadd.f32 %v1172_v62, %v1110_v59 }
 0x25c   :  { %v1579_v3 = vpop.f32.mrb[32].mxu1  ;;  %v1242_v4 = vadd.f32 %v1241_v2, %v1211_v1 }
 0x25d   :  { %v1112_v5 = vmax.f32 %v1579_v3, 0.0  ;;  %v1016_v6 = vpop.f32.mrb[33].mxu1 }
 0x25e   :  { %v1111_v7 = vmax.f32 %v1016_v6, 0.0 }
 0x25f   :  { %1144 = vst [vmem:[#allocation11 + $0x88] sm:$0xff] %v1112_v5  ;;  %v1213_v10 = vmul.f32 %v1112_v5, %v1112_v5 }
 0x260   :  { %1143 = vst [vmem:[#allocation11 + $0x80] sm:$0xff] %v1111_v7  ;;  %v1174_v8 = vadd.f32 %v1173_v21, %v1111_v7  ;;  %v1212_v9 = vmul.f32 %v1111_v7, %v1111_v7 }
 0x262   :  { %v1243_v11 = vadd.f32 %v1242_v4, %v1212_v9  ;;  %v1175_v12 = vadd.f32 %v1174_v8, %v1112_v5 }
 0x264   :  { %v1582_v13 = vpop.f32.mrb[34].mxu1  ;;  %v1244_v15 = vadd.f32 %v1243_v11, %v1213_v10 }
 0x265   :  { %v1114_v16 = vmax.f32 %v1582_v13, 0.0  ;;  %v1026_v17 = vpop.f32.mrb[35].mxu1 }
 0x266   :  { %v1113_v19 = vmax.f32 %v1026_v17, 0.0 }
 0x267   :  { %1146 = vst [vmem:[#allocation11 + $0x98] sm:$0xff] %v1114_v16  ;;  %v1215_v23 = vmul.f32 %v1114_v16, %v1114_v16 }
 0x268   :  { %1145 = vst [vmem:[#allocation11 + $0x90] sm:$0xff] %v1113_v19  ;;  %v1176_v20 = vadd.f32 %v1175_v12, %v1113_v19  ;;  %v1214_v22 = vmul.f32 %v1113_v19, %v1113_v19 }
 0x26a   :  { %v1245_v25 = vadd.f32 %v1244_v15, %v1214_v22  ;;  %v1177_v26 = vadd.f32 %v1176_v20, %v1114_v16 }
 0x26c   :  { %v1585_v27 = vpop.f32.mrb[36].mxu1  ;;  %v1246_v28 = vadd.f32 %v1245_v25, %v1215_v23 }
 0x26d   :  { %v1116_v29 = vmax.f32 %v1585_v27, 0.0  ;;  %v1036_v30 = vpop.f32.mrb[37].mxu1 }
 0x26e   :  { %v1115_v31 = vmax.f32 %v1036_v30, 0.0 }
 0x26f   :  { %1148 = vst [vmem:[#allocation11 + $0xa8] sm:$0xff] %v1116_v29  ;;  %v1217_v34 = vmul.f32 %v1116_v29, %v1116_v29 }
 0x270   :  { %1147 = vst [vmem:[#allocation11 + $0xa0] sm:$0xff] %v1115_v31  ;;  %v1178_v32 = vadd.f32 %v1177_v26, %v1115_v31  ;;  %v1216_v33 = vmul.f32 %v1115_v31, %v1115_v31 }
 0x272   :  { %v1247_v35 = vadd.f32 %v1246_v28, %v1216_v33  ;;  %v1179_v36 = vadd.f32 %v1178_v32, %v1116_v29 }
 0x274   :  { %v1588_v37 = vpop.f32.mrb[38].mxu1  ;;  %v1248_v39 = vadd.f32 %v1247_v35, %v1217_v34 }
 0x275   :  { %v1118_v18 = vmax.f32 %v1588_v37, 0.0  ;;  %v1046_v40 = vpop.f32.mrb[39].mxu1 }
 0x276   :  { %v1117_v41 = vmax.f32 %v1046_v40, 0.0 }
 0x277   :  { %1150 = vst [vmem:[#allocation11 + $0xb8] sm:$0xff] %v1118_v18  ;;  %v1219_v47 = vmul.f32 %v1118_v18, %v1118_v18 }
 0x278   :  { %1149 = vst [vmem:[#allocation11 + $0xb0] sm:$0xff] %v1117_v41  ;;  %v1180_v42 = vadd.f32 %v1179_v36, %v1117_v41  ;;  %v1218_v43 = vmul.f32 %v1117_v41, %v1117_v41  ;;  %v1591_v24 = vpop.f32.mrb[40].mxu1 }
 0x279   :  { %v1120_v45 = vmax.f32 %v1591_v24, 0.0  ;;  %v1056_v46 = vpop.f32.mrb[41].mxu1 }
 0x27a   :  { %v1249_v38 = vadd.f32 %v1248_v39, %v1218_v43  ;;  %v1119_v48 = vmax.f32 %v1056_v46, 0.0  ;;  %v1181_v49 = vadd.f32 %v1180_v42, %v1118_v18 }
 0x27b   :  { %1152 = vst [vmem:[#allocation11 + $0xc8] sm:$0xff] %v1120_v45  ;;  %v1221_v54 = vmul.f32 %v1120_v45, %v1120_v45 }
 0x27c   :  { %1151 = vst [vmem:[#allocation11 + $0xc0] sm:$0xff] %v1119_v48  ;;  %v1182_v50 = vadd.f32 %v1181_v49, %v1119_v48  ;;  %v1220_v51 = vmul.f32 %v1119_v48, %v1119_v48  ;;  %v1250_v44 = vadd.f32 %v1249_v38, %v1219_v47  ;;  %v1594_v52 = vpop.f32.mrb[42].mxu1 }
 0x27d   :  { %v1122_v53 = vmax.f32 %v1594_v52, 0.0  ;;  %v1066_v58 = vpop.f32.mrb[43].mxu1 }
 0x27e   :  { %v1251_v14 = vadd.f32 %v1250_v44, %v1220_v51  ;;  %v1121_v55 = vmax.f32 %v1066_v58, 0.0  ;;  %v1183_v56 = vadd.f32 %v1182_v50, %v1120_v45 }
 0x27f   :  { %1154 = vst [vmem:[#allocation11 + $0xd8] sm:$0xff] %v1122_v53  ;;  %v1223_v63 = vmul.f32 %v1122_v53, %v1122_v53 }
 0x280   :  { %1153 = vst [vmem:[#allocation11 + $0xd0] sm:$0xff] %v1121_v55  ;;  %v1184_v57 = vadd.f32 %v1183_v56, %v1121_v55  ;;  %v1222_v0 = vmul.f32 %v1121_v55, %v1121_v55  ;;  %v1252_v59 = vadd.f32 %v1251_v14, %v1221_v54  ;;  %v1597_v60 = vpop.f32.mrb[44].mxu1 }
 0x281   :  { %v1124_v61 = vmax.f32 %v1597_v60, 0.0  ;;  %v1076_v62 = vpop.f32.mrb[45].mxu1 }
 0x282   :  { %v1253_v1 = vadd.f32 %v1252_v59, %v1222_v0  ;;  %v1123_v2 = vmax.f32 %v1076_v62, 0.0  ;;  %v1185_v21 = vadd.f32 %v1184_v57, %v1122_v53 }
 0x283   :  { %1156 = vst [vmem:[#allocation11 + $0xe8] sm:$0xff] %v1124_v61  ;;  %v1225_v9 = vmul.f32 %v1124_v61, %v1124_v61 }
 0x284   :  { %1155 = vst [vmem:[#allocation11 + $0xe0] sm:$0xff] %v1123_v2  ;;  %v1186_v3 = vadd.f32 %v1185_v21, %v1123_v2  ;;  %v1224_v4 = vmul.f32 %v1123_v2, %v1123_v2  ;;  %v1254_v5 = vadd.f32 %v1253_v1, %v1223_v63  ;;  %v1600_v6 = vpop.f32.mrb[46].mxu1 }
 0x285   :  { %v1126_v7 = vmax.f32 %v1600_v6, 0.0  ;;  %v1086_v8 = vpop.f32.mrb[47].mxu1 }
 0x286   :  { %v1255_v10 = vadd.f32 %v1254_v5, %v1224_v4  ;;  %v1125_v11 = vmax.f32 %v1086_v8, 0.0  ;;  %v1187_v12 = vadd.f32 %v1186_v3, %v1124_v61 }
 0x287   :  { %1158 = vst [vmem:[#allocation11 + $0xf8] sm:$0xff] %v1126_v7 }
 0x288   :  { %1157 = vst [vmem:[#allocation11 + $0xf0] sm:$0xff] %v1125_v11  ;;  %v1188_v13 = vadd.f32 %v1187_v12, %v1125_v11  ;;  %v1226_v15 = vmul.f32 %v1125_v11, %v1125_v11  ;;  %v1256_v16 = vadd.f32 %v1255_v10, %v1225_v9 }
 0x289   :  { %1823 = shalt.err (!%p1820_p8)
}
 0x28a   :  { %s1824_s27 = scalar_lea.hbm %s2065_s4, 4096 }
 0x28b   :  { %p1825_p9 = scmp.ne.s32.totalorder %s2065_s4, %s1824_s27  ;;  %p1828_p10 = scmp.lt.u32.totalorder %s1824_s27, %s2065_s4 }
 0x28d   :  { %p1830_p11 = pnand %p1828_p10, %p1825_p9 }
 0x28f   :  { %1833 = shalt.err (!%p1830_p11)
}
 0x290   :  { %1278 = dma.vmem_to_hbm [thread:$0]  %s1273_s23, 4096, %s2065_s4, [#allocation5], %s1892_s1, %s1892_s1, %s1893_s21   ;;  %v1227_v17 = vmul.f32 %v1126_v7, %v1126_v7  ;;  %v1189_v19 = vadd.f32 %v1188_v13, %v1126_v7  ;;  %v1257_v20 = vadd.f32 %v1256_v16, %v1226_v15 }
 0x291   :  { %s1897_s10 = smov [#allocation12]   ;;  %s1898_s11 = smov [#allocation14]  }
 0x292   :  { %v1190_v22 = vrot.slane %v1189_v19, 4  ;;  %v1258_v23 = vadd.f32 %v1257_v20, %v1227_v17  ;;  %s1285_s0 = sshll.u32 %s1897_s10, 4  ;;  %s1295_s12 = sshll.u32 %s1898_s11, 4  ;;  %s1286_s0 = int_to_ptr.vmem [resolvable:$true] %s1285_s0  ;;  %s1296_s12 = int_to_ptr.vmem [resolvable:$true] %s1295_s12 }
 0x293   :  { %s1834_s4 = scalar_lea.vmem %s1286_s0, 128  ;;  %p1839_p13 = scmp.lt.s32.totalorder %s1286_s0, %s1286_s0 }
 0x294   :  { %v1259_v25 = vrot.slane %v1258_v23, 4  ;;  %v1191_v26 = vadd.f32 %v1190_v22, %v1189_v19  ;;  %p1835_p12 = scmp.ne.s32.totalorder %s1286_s0, %s1834_s4  ;;  %p1840_p0 = scmp.lt.s32.totalorder %s1834_s4, %s1834_s4 }
 0x296   :  { %v1192_v27 = vrot.slane %v1191_v26, 2  ;;  %v1260_v28 = vadd.f32 %v1259_v25, %v1258_v23  ;;  %p1841_p1 = por %p1840_p0, %p1839_p13 }
 0x298   :  { %v1193_v29 = vadd.f32 %v1192_v27, %v1191_v26  ;;  %v1261_v30 = vrot.slane %v1260_v28, 2  ;;  %p1842_p2 = pnand %p1841_p1, %p1835_p12 }
 0x29a   :  { %v1194_v31 = vrot.slane %v1193_v29, 1  ;;  %v1262_v32 = vadd.f32 %v1261_v30, %v1260_v28 }
 0x29c   :  { %v1195_v33 = vadd.f32 %v1194_v31, %v1193_v29  ;;  %v1263_v34 = vrot.slane %v1262_v32, 1 }
 0x29e   :  { %1265 = vst [vmem:[#allocation12] sm:$0xff] %v1195_v33  ;;  %v1264_v35 = vadd.f32 %v1263_v34, %v1262_v32 }
 0x29f   :  { %1845 = shalt.err (!%p1842_p2)
}
 0x2a0   :  { %s1846_s13 = scalar_lea.hbm %s2066_s5, 128 }
 0x2a1   :  { %p1847_p3 = scmp.ne.s32.totalorder %s2066_s5, %s1846_s13  ;;  %p1850_p4 = scmp.lt.u32.totalorder %s1846_s13, %s2066_s5 }
 0x2a3   :  { %p1852_p5 = pnand %p1850_p4, %p1847_p3 }
 0x2a5   :  { %1855 = shalt.err (!%p1852_p5)
}
 0x2a6   :  { %1288 = dma.vmem_to_hbm [thread:$0]  %s1286_s0, 128, %s2066_s5, [#allocation13]   ;;  %1266 = vst [vmem:[#allocation14] sm:$0xff] %v1264_v35 }
 0x2a7   :  { %s1856_s20 = scalar_lea.vmem %s1296_s12, 128  ;;  %p1861_p7 = scmp.lt.s32.totalorder %s1296_s12, %s1296_s12 }
 0x2a8   :  { %p1857_p6 = scmp.ne.s32.totalorder %s1296_s12, %s1856_s20  ;;  %p1862_p8 = scmp.lt.s32.totalorder %s1856_s20, %s1856_s20 }
 0x2aa   :  { %p1863_p9 = por %p1862_p8, %p1861_p7 }
 0x2ac   :  { %p1864_p10 = pnand %p1863_p9, %p1857_p6 }
 0x2ae   :  { %1867 = shalt.err (!%p1864_p10)
}
 0x2af   :  { %s1868_s3 = scalar_lea.hbm %s2067_s6, 128 }
 0x2b0   :  { %p1869_p11 = scmp.ne.s32.totalorder %s2067_s6, %s1868_s3  ;;  %p1872_p12 = scmp.lt.u32.totalorder %s1868_s3, %s2067_s6 }
 0x2b2   :  { %p1874_p13 = pnand %p1872_p12, %p1869_p11 }
 0x2b4   :  { %1877 = shalt.err (!%p1874_p13)
}
 0x2b5   :  { %1298 = dma.vmem_to_hbm [thread:$0]  %s1296_s12, 128, %s2067_s6, [#allocation13]  }
 0x2b6   :  { %1884 = dma.done.wait [#allocation5], 4096  }
 0x2b7   :  { %1885 = vsyncadd [#allocation5], 4294963200 }
 0x2b8   :  { %1886 = dma.done.wait [#allocation13], 256  }
 0x2b9   :  { %1887 = vsyncadd [#allocation13], 4294967040 }
 0x2ba   :  { %1308 = vsyncpa [#allocation4], 1 }
 0x2bb   :  { %1309 = vsyncpa [#allocation7], 1 }
 0x2bc   :  { %1310 = vsyncpa [#allocation10], 1 }
 0x2bd   :  { %1311 = vsyncpa [#allocation5], 1 }
 0x2be   :  { %1312 = vsyncpa [#allocation13], 1 }

</bundles_post_ra>
